<compile_context>
chip_gen: v6e
topology: v6e:2x2x1
jax: 0.10.0
libtpu: 0.0.40
codegen_flags: <defaults>
</compile_context>

<pallas_src>
import math

import jax
import jax.numpy as jnp
from jax.experimental import pallas as pl
from jax.experimental.pallas import tpu as pltpu


def _round_up(x, m):
    return ((x + m - 1) // m) * m


def _vmem_limit_bytes():
    """Per-generation VMEM budget: ~3/4 of physical, capped at 96 MiB.

    v5e/v6e (128 MiB physical) -> 96 MiB; v7x (64 MiB physical) -> 48 MiB.
    Falls back to the conservative v7x figure if the query is unavailable.
    """
    try:
        phys = int(pltpu.get_tpu_info().vmem_capacity_bytes)
    except Exception:
        phys = 64 * 1024 * 1024
    return int(min(96 * 1024 * 1024, (phys * 3) // 4))


def _pick_tile_m(m, din, dout, x_itemsize, w_itemsize, out_itemsize,
                 tile_m_req, vmem_budget):
    """Row tile: multiple of 8 sublanes; >=2 grid points when possible (so both
    v7x TensorCores get work); double-buffered working set within the VMEM budget."""
    tile_m = max(8, _round_up(min(tile_m_req, max(m, 1)), 8))
    # Megacore: guarantee at least 2 grid points along the parallel M axis.
    if _round_up(m, tile_m) // tile_m < 2 and m > 8:
        tile_m = _round_up(-(-m // 2), 8)

    def working_set(tm):
        return (2 * tm * din * x_itemsize        # double-buffered x tiles
                + 2 * din * dout * w_itemsize    # resident weight (conservative x2)
                + 2 * dout * 4                   # bias
                + 2 * tm * dout * out_itemsize   # double-buffered out tiles
                + tm * dout * 4)                 # f32 accumulator value

    while tile_m > 8 and working_set(tile_m) > 0.7 * vmem_budget:
        tile_m = max(8, _round_up(tile_m // 2, 8))
    return tile_m


# ----------------------------------------------------------------------------- #
# One-time parameter preparation (hoisted out of the forward path).
# ----------------------------------------------------------------------------- #
def prepare_params(params, *, mxu_dtype=jnp.bfloat16):
    """Transpose weights to (din, dout), cast to the MXU dtype, reshape biases
    to f32 rows.  Done once at init time so no layout-changing XLA op (transpose
    / pad / concat) runs inside the memory-bound forward pass."""
    def prep_w(w):
        return jnp.transpose(w).astype(mxu_dtype)

    def prep_b(b):
        return b.astype(jnp.float32).reshape(1, -1)

    return {
        "wq_t": prep_w(params["wq"]), "bq": prep_b(params["bq"]),
        "wk_t": prep_w(params["wk"]), "bk": prep_b(params["bk"]),
        "wv_t": prep_w(params["wv"]), "bv": prep_b(params["bv"]),
        "wo_t": prep_w(params["wo"]), "bo": prep_b(params["bo"]),
    }


# ----------------------------------------------------------------------------- #
# Generic weight-resident Linear:  y = x @ w_t + b    (w_t: (din, dout), prepped)
# ----------------------------------------------------------------------------- #
def _linear_kernel(x_ref, w_ref, b_ref, o_ref):
    # x tile cast to the MXU dtype (bf16) in-register; f32 MXU accumulation;
    # f32 bias add; single fused store into the output tile.
    x = x_ref[...].astype(w_ref.dtype)
    acc = jnp.dot(x, w_ref[...], preferred_element_type=jnp.float32)
    o_ref[...] = (acc + b_ref[...]).astype(o_ref.dtype)


def linear_pallas(x, w_t, b_row, *, tile_m=512, out_dtype=None):
    """nn.Linear forward with a pre-transposed / pre-cast weight.

    1-D grid over row tiles with a constant weight index_map => the weight block
    is DMA'd to VMEM once and stays resident across all M tiles.
    """
    lead = x.shape[:-1]
    din, dout = int(w_t.shape[0]), int(w_t.shape[1])
    out_dtype = out_dtype or x.dtype
    m = 1
    for d in lead:
        m *= int(d)
    x2 = x.reshape(m, din)

    vmem_budget = _vmem_limit_bytes()
    tile_m = _pick_tile_m(m, din, dout, x2.dtype.itemsize, w_t.dtype.itemsize,
                          jnp.dtype(out_dtype).itemsize, tile_m, vmem_budget)
    m_p = _round_up(m, tile_m)
    if m_p != m:
        x2 = jnp.pad(x2, ((0, m_p - m), (0, 0)))

    grid = (m_p // tile_m,)
    # Weight and bias read once (resident), x read once, output written once.
    cost = pl.CostEstimate(
        flops=2 * m_p * din * dout,
        transcendentals=0,
        bytes_accessed=(m_p * din * x2.dtype.itemsize
                        + din * dout * w_t.dtype.itemsize
                        + dout * 4
                        + m_p * dout * jnp.dtype(out_dtype).itemsize),
    )
    # TODO(synk): add a K-reduction grid axis (f32 VMEM scratch + pl.when
    # init/finalize, "arbitrary" semantics) once din exceeds ~2K so the per-step
    # working set stays bounded on v7x (64 MiB VMEM).  If profiling shows exposed
    # DMA on the x stream, deepen it with pipeline_mode=pl.Buffered(3).
    out = pl.pallas_call(
        _linear_kernel,
        out_shape=jax.ShapeDtypeStruct((m_p, dout), out_dtype),
        grid=grid,
        in_specs=[
            pl.BlockSpec((tile_m, din), lambda i: (i, 0)),
            pl.BlockSpec((din, dout), lambda i: (0, 0)),   # resident weight
            pl.BlockSpec((1, dout), lambda i: (0, 0)),     # resident bias
        ],
        out_specs=pl.BlockSpec((tile_m, dout), lambda i: (i, 0)),
        compiler_params=pltpu.CompilerParams(
            dimension_semantics=("parallel",),
            vmem_limit_bytes=vmem_budget,
        ),
        cost_estimate=cost,
    )(x2, w_t, b_row)

    if m_p != m:
        out = out[:m]
    return out.reshape(tuple(lead) + (dout,))


# ----------------------------------------------------------------------------- #
# Self-correlation fast path: one x stream, three resident weights, three outputs.
# ----------------------------------------------------------------------------- #
def _qkv_kernel(x_ref, wq_ref, bq_ref, wk_ref, bk_ref, wv_ref, bv_ref,
                q_ref, k_ref, v_ref):
    x = x_ref[...].astype(wq_ref.dtype)
    q_ref[...] = (jnp.dot(x, wq_ref[...], preferred_element_type=jnp.float32)
                  + bq_ref[...]).astype(q_ref.dtype)
    k_ref[...] = (jnp.dot(x, wk_ref[...], preferred_element_type=jnp.float32)
                  + bk_ref[...]).astype(k_ref.dtype)
    v_ref[...] = (jnp.dot(x, wv_ref[...], preferred_element_type=jnp.float32)
                  + bv_ref[...]).astype(v_ref.dtype)


def qkv_projection_pallas(x, prep, *, tile_m=512, out_dtype=None):
    """Q/K/V projection with x read from HBM once; q/k/v are emitted as three
    separate pallas outputs so no post-hoc lane slicing / activation copies."""
    lead = x.shape[:-1]
    out_dtype = out_dtype or x.dtype
    wq_t, wk_t, wv_t = prep["wq_t"], prep["wk_t"], prep["wv_t"]
    bq, bk, bv = prep["bq"], prep["bk"], prep["bv"]
    din = int(wq_t.shape[0])
    dq, dk, dv = int(wq_t.shape[1]), int(wk_t.shape[1]), int(wv_t.shape[1])
    m = 1
    for d in lead:
        m *= int(d)
    x2 = x.reshape(m, din)

    vmem_budget = _vmem_limit_bytes()
    ob = jnp.dtype(out_dtype).itemsize
    tile_m = _pick_tile_m(m, din, dq + dk + dv, x2.dtype.itemsize,
                          wq_t.dtype.itemsize, ob, tile_m, vmem_budget)
    m_p = _round_up(m, tile_m)
    if m_p != m:
        x2 = jnp.pad(x2, ((0, m_p - m), (0, 0)))

    grid = (m_p // tile_m,)
    cost = pl.CostEstimate(
        flops=2 * m_p * din * (dq + dk + dv),
        transcendentals=0,
        bytes_accessed=(m_p * din * x2.dtype.itemsize
                        + din * (dq + dk + dv) * wq_t.dtype.itemsize
                        + (dq + dk + dv) * 4
                        + m_p * (dq + dk + dv) * ob),
    )
    q, k, v = pl.pallas_call(
        _qkv_kernel,
        out_shape=(jax.ShapeDtypeStruct((m_p, dq), out_dtype),
                   jax.ShapeDtypeStruct((m_p, dk), out_dtype),
                   jax.ShapeDtypeStruct((m_p, dv), out_dtype)),
        grid=grid,
        in_specs=[
            pl.BlockSpec((tile_m, din), lambda i: (i, 0)),
            pl.BlockSpec((din, dq), lambda i: (0, 0)),   # resident weights/biases
            pl.BlockSpec((1, dq), lambda i: (0, 0)),
            pl.BlockSpec((din, dk), lambda i: (0, 0)),
            pl.BlockSpec((1, dk), lambda i: (0, 0)),
            pl.BlockSpec((din, dv), lambda i: (0, 0)),
            pl.BlockSpec((1, dv), lambda i: (0, 0)),
        ],
        out_specs=(pl.BlockSpec((tile_m, dq), lambda i: (i, 0)),
                   pl.BlockSpec((tile_m, dk), lambda i: (i, 0)),
                   pl.BlockSpec((tile_m, dv), lambda i: (i, 0))),
        compiler_params=pltpu.CompilerParams(
            dimension_semantics=("parallel",),
            vmem_limit_bytes=vmem_budget,
        ),
        cost_estimate=cost,
    )(x2, wq_t, bq, wk_t, bk, wv_t, bv)

    if m_p != m:
        q, k, v = q[:m], k[:m], v[:m]
    lead = tuple(lead)
    return (q.reshape(lead + (dq,)), k.reshape(lead + (dk,)),
            v.reshape(lead + (dv,)))


# ----------------------------------------------------------------------------- #
# Inner correlation stand-in (externally injected module in the original code).
# ----------------------------------------------------------------------------- #
def scaled_dot_product_correlation(q, k, v, attn_mask):
    # q: (B, L, H, E)  k: (B, S, H, E)  v: (B, S, H, D)
    scale = 1.0 / jnp.sqrt(jnp.float32(q.shape[-1]))
    scores = jnp.einsum("blhe,bshe->bhls", q, k) * scale
    if attn_mask is not None:
        # Finite fill so fully-masked rows don't softmax to NaN.
        scores = jnp.where(attn_mask, jnp.float32(-1e9), scores)
    attn = jax.nn.softmax(scores, axis=-1)
    out = jnp.einsum("bhls,bshd->blhd", attn, v)
    return out, attn


# ----------------------------------------------------------------------------- #
# AutoCorrelationLayer forward.
# ----------------------------------------------------------------------------- #
def auto_correlation_layer_forward(prep, queries, keys, values, attn_mask, *,
                                   n_heads, inner_correlation,
                                   self_correlation=False, tile_m=512):
    """`prep` comes from prepare_params(); `self_correlation` is an explicit
    static flag (object-identity dispatch silently disappears under jit)."""
    B, L, _ = queries.shape
    _, S, _ = keys.shape
    H = n_heads

    if self_correlation:
        q, k, v = qkv_projection_pallas(queries, prep, tile_m=tile_m)
    else:
        q = linear_pallas(queries, prep["wq_t"], prep["bq"], tile_m=tile_m)
        k = linear_pallas(keys, prep["wk_t"], prep["bk"], tile_m=tile_m)
        v = linear_pallas(values, prep["wv_t"], prep["bv"], tile_m=tile_m)

    q = q.reshape(B, L, H, -1)
    k = k.reshape(B, S, H, -1)
    v = v.reshape(B, S, H, -1)

    out, attn = inner_correlation(q, k, v, attn_mask)
    out = out.reshape(B, L, -1)
    # TODO(synk): for long sequences, fuse this out-projection into a flash-style
    # inner-correlation epilogue so `out` never round-trips HBM before the linear.
    out = linear_pallas(out, prep["wo_t"], prep["bo"], tile_m=tile_m)
    return out, attn


# ----------------------------------------------------------------------------- #
# Pure-JAX references (for validation).
# ----------------------------------------------------------------------------- #
def _linear_ref_f32(x, w, b):
    return jnp.einsum("...i,oi->...o", x, w,
                      precision=jax.lax.Precision.HIGHEST) + b


def _linear_ref_bf16(x, w, b):
    # Same dtype policy as the kernels: bf16 operands, f32 MXU acc, f32 bias.
    y = jnp.dot(x.astype(jnp.bfloat16).reshape(-1, x.shape[-1]),
                jnp.transpose(w).astype(jnp.bfloat16),
                preferred_element_type=jnp.float32)
    y = y + b.astype(jnp.float32)
    return y.reshape(x.shape[:-1] + (w.shape[0],)).astype(x.dtype)


def auto_correlation_layer_ref(params, queries, keys, values, attn_mask, *,
                               n_heads, inner_correlation, linear_fn):
    B, L, _ = queries.shape
    _, S, _ = keys.shape
    H = n_heads
    q = linear_fn(queries, params["wq"], params["bq"]).reshape(B, L, H, -1)
    k = linear_fn(keys, params["wk"], params["bk"]).reshape(B, S, H, -1)
    v = linear_fn(values, params["wv"], params["bv"]).reshape(B, S, H, -1)
    out, attn = inner_correlation(q, k, v, attn_mask)
    out = out.reshape(B, L, -1)
    return linear_fn(out, params["wo"], params["bo"]), attn


if __name__ == "__main__":
    # Small shapes consistent with the module: queries/keys/values (B, L, d_model).
    B, L, D_MODEL, N_HEADS = 2, 8, 32, 4
    d_keys = D_MODEL // N_HEADS
    d_values = D_MODEL // N_HEADS

    key = jax.random.PRNGKey(0)
    kx, kq, kk, kv, ko = jax.random.split(key, 5)

    def init_linear(k, dout, din):
        kw, kb = jax.random.split(k)
        bound = 1.0 / math.sqrt(din)   # nn.Linear default init bounds
        w = jax.random.uniform(kw, (dout, din), jnp.float32, -bound, bound)
        b = jax.random.uniform(kb, (dout,), jnp.float32, -bound, bound)
        return w, b

    wq, bq = init_linear(kq, d_keys * N_HEADS, D_MODEL)
    wk, bk = init_linear(kk, d_keys * N_HEADS, D_MODEL)
    wv, bv = init_linear(kv, d_values * N_HEADS, D_MODEL)
    wo, bo = init_linear(ko, D_MODEL, d_values * N_HEADS)
    params = dict(wq=wq, bq=bq, wk=wk, bk=bk, wv=wv, bv=bv, wo=wo, bo=bo)

    # One-time parameter prep (transpose + bf16 cast) hoisted out of the forward.
    prep = prepare_params(params)

    x = jax.random.normal(kx, (B, L, D_MODEL), dtype=jnp.float32)

    # Fused self-correlation path.
    out, attn = auto_correlation_layer_forward(
        prep, x, x, x, None, n_heads=N_HEADS,
        inner_correlation=scaled_dot_product_correlation,
        self_correlation=True)
    out = jax.block_until_ready(out)
    attn = jax.block_until_ready(attn)

    # Non-fused (cross-correlation) path, exercised once for coverage.
    out_x, attn_x = auto_correlation_layer_forward(
        prep, x, x, x, None, n_heads=N_HEADS,
        inner_correlation=scaled_dot_product_correlation,
        self_correlation=False)
    out_x = jax.block_until_ready(out_x)

    # Reference with the same bf16 dtype policy (validates the kernels exactly).
    out_ref, attn_ref = auto_correlation_layer_ref(
        params, x, x, x, None, n_heads=N_HEADS,
        inner_correlation=scaled_dot_product_correlation,
        linear_fn=_linear_ref_bf16)
    # Full-f32 reference (validates PyTorch semantics up to bf16 rounding).
    out_f32, attn_f32 = auto_correlation_layer_ref(
        params, x, x, x, None, n_heads=N_HEADS,
        inner_correlation=scaled_dot_product_correlation,
        linear_fn=_linear_ref_f32)

    assert out.shape == (B, L, D_MODEL), out.shape
    assert attn.shape == attn_ref.shape, attn.shape
    assert jnp.allclose(out, out_ref, atol=1e-4, rtol=1e-4), "fused path mismatch vs bf16 reference"
    assert jnp.allclose(attn, attn_ref, atol=1e-4, rtol=1e-4), "attn mismatch vs bf16 reference"
    assert jnp.allclose(out_x, out_ref, atol=1e-4, rtol=1e-4), "non-fused path mismatch vs bf16 reference"
    assert jnp.allclose(out, out_f32, atol=5e-2, rtol=5e-2), "output deviates from f32 reference"
    assert jnp.allclose(attn, attn_f32, atol=5e-2, rtol=5e-2), "attn deviates from f32 reference"

    print("KERNEL_OK")
</pallas_src>

<mosaic_0001>
module attributes {stable_mosaic.version = 11 : i64} {
  func.func @_qkv_kernel(%arg0: i32, %arg1: memref<8x32xf32, #tpu.memory_space<vmem>>, %arg2: memref<32x32xbf16, #tpu.memory_space<vmem>>, %arg3: memref<1x32xf32, #tpu.memory_space<vmem>>, %arg4: memref<32x32xbf16, #tpu.memory_space<vmem>>, %arg5: memref<1x32xf32, #tpu.memory_space<vmem>>, %arg6: memref<32x32xbf16, #tpu.memory_space<vmem>>, %arg7: memref<1x32xf32, #tpu.memory_space<vmem>>, %arg8: memref<8x32xf32, #tpu.memory_space<vmem>>, %arg9: memref<8x32xf32, #tpu.memory_space<vmem>>, %arg10: memref<8x32xf32, #tpu.memory_space<vmem>>) attributes {dimension_semantics = [#tpu.dimension_semantics<parallel>], iteration_bounds = array<i64: 2>, scalar_prefetch = 0 : i64, scratch_operands = 0 : i64, tpu.core_type = #tpu.core_type<tc>, window_params = [{transform_indices = @transform_0, window_bounds = array<i64: 8, 32>}, {pipeline_mode = #tpu.pipeline_mode<synchronous>, transform_indices = @transform_1, window_bounds = array<i64: 32, 32>}, {pipeline_mode = #tpu.pipeline_mode<synchronous>, transform_indices = @transform_2, window_bounds = array<i64: 1, 32>}, {pipeline_mode = #tpu.pipeline_mode<synchronous>, transform_indices = @transform_3, window_bounds = array<i64: 32, 32>}, {pipeline_mode = #tpu.pipeline_mode<synchronous>, transform_indices = @transform_4, window_bounds = array<i64: 1, 32>}, {pipeline_mode = #tpu.pipeline_mode<synchronous>, transform_indices = @transform_5, window_bounds = array<i64: 32, 32>}, {pipeline_mode = #tpu.pipeline_mode<synchronous>, transform_indices = @transform_6, window_bounds = array<i64: 1, 32>}, {transform_indices = @transform_7, window_bounds = array<i64: 8, 32>}, {transform_indices = @transform_8, window_bounds = array<i64: 8, 32>}, {transform_indices = @transform_9, window_bounds = array<i64: 8, 32>}]} {
    %c0 = arith.constant 0 : index
    %c0_0 = arith.constant 0 : index
    %0 = vector.load %arg1[%c0, %c0_0] : memref<8x32xf32, #tpu.memory_space<vmem>>, vector<8x32xf32>
    %1 = arith.truncf %0 : vector<8x32xf32> to vector<8x32xbf16>
    %c0_1 = arith.constant 0 : index
    %c0_2 = arith.constant 0 : index
    %2 = vector.load %arg2[%c0_1, %c0_2] : memref<32x32xbf16, #tpu.memory_space<vmem>>, vector<32x32xbf16>
    %cst = arith.constant dense<0.000000e+00> : vector<8x32xf32>
    %3 = tpu.matmul %1, %2, %cst {dimension_numbers = #tpu.dot_dimension_numbers<[1], [0], [0], [1], [0, 0, 1, 1], [], []>} : vector<8x32xbf16>, vector<32x32xbf16>, vector<8x32xf32> -> vector<8x32xf32>
    %c0_3 = arith.constant 0 : index
    %c0_4 = arith.constant 0 : index
    %4 = vector.load %arg3[%c0_3, %c0_4] : memref<1x32xf32, #tpu.memory_space<vmem>>, vector<1x32xf32>
    %5 = vector.broadcast %4 : vector<1x32xf32> to vector<8x32xf32>
    %6 = arith.addf %3, %5 : vector<8x32xf32>
    %c0_5 = arith.constant 0 : index
    %c0_6 = arith.constant 0 : index
    %7 = vector.load %arg8[%c0_5, %c0_6] : memref<8x32xf32, #tpu.memory_space<vmem>>, vector<8x32xf32>
    tpu.vector_store %arg8[%c0_5, %c0_6], %6 {strides = array<i32>} : memref<8x32xf32, #tpu.memory_space<vmem>>, vector<8x32xf32>,
    %c0_7 = arith.constant 0 : index
    %c0_8 = arith.constant 0 : index
    %8 = vector.load %arg4[%c0_7, %c0_8] : memref<32x32xbf16, #tpu.memory_space<vmem>>, vector<32x32xbf16>
    %cst_9 = arith.constant dense<0.000000e+00> : vector<8x32xf32>
    %9 = tpu.matmul %1, %8, %cst_9 {dimension_numbers = #tpu.dot_dimension_numbers<[1], [0], [0], [1], [0, 0, 1, 1], [], []>} : vector<8x32xbf16>, vector<32x32xbf16>, vector<8x32xf32> -> vector<8x32xf32>
    %c0_10 = arith.constant 0 : index
    %c0_11 = arith.constant 0 : index
    %10 = vector.load %arg5[%c0_10, %c0_11] : memref<1x32xf32, #tpu.memory_space<vmem>>, vector<1x32xf32>
    %11 = vector.broadcast %10 : vector<1x32xf32> to vector<8x32xf32>
    %12 = arith.addf %9, %11 : vector<8x32xf32>
    %c0_12 = arith.constant 0 : index
    %c0_13 = arith.constant 0 : index
    %13 = vector.load %arg9[%c0_12, %c0_13] : memref<8x32xf32, #tpu.memory_space<vmem>>, vector<8x32xf32>
    tpu.vector_store %arg9[%c0_12, %c0_13], %12 {strides = array<i32>} : memref<8x32xf32, #tpu.memory_space<vmem>>, vector<8x32xf32>,
    %c0_14 = arith.constant 0 : index
    %c0_15 = arith.constant 0 : index
    %14 = vector.load %arg6[%c0_14, %c0_15] : memref<32x32xbf16, #tpu.memory_space<vmem>>, vector<32x32xbf16>
    %cst_16 = arith.constant dense<0.000000e+00> : vector<8x32xf32>
    %15 = tpu.matmul %1, %14, %cst_16 {dimension_numbers = #tpu.dot_dimension_numbers<[1], [0], [0], [1], [0, 0, 1, 1], [], []>} : vector<8x32xbf16>, vector<32x32xbf16>, vector<8x32xf32> -> vector<8x32xf32>
    %c0_17 = arith.constant 0 : index
    %c0_18 = arith.constant 0 : index
    %16 = vector.load %arg7[%c0_17, %c0_18] : memref<1x32xf32, #tpu.memory_space<vmem>>, vector<1x32xf32>
    %17 = vector.broadcast %16 : vector<1x32xf32> to vector<8x32xf32>
    %18 = arith.addf %15, %17 : vector<8x32xf32>
    %c0_19 = arith.constant 0 : index
    %c0_20 = arith.constant 0 : index
    %19 = vector.load %arg10[%c0_19, %c0_20] : memref<8x32xf32, #tpu.memory_space<vmem>>, vector<8x32xf32>
    tpu.vector_store %arg10[%c0_19, %c0_20], %18 {strides = array<i32>} : memref<8x32xf32, #tpu.memory_space<vmem>>, vector<8x32xf32>,
    return
  }
  func.func @transform_0(%arg0: i32) -> (i32, i32) {
    %c0_i32 = arith.constant 0 : i32
    %c0_i32_0 = arith.constant 0 : i32
    return %arg0, %c0_i32 : i32, i32
  }
  func.func @transform_1(%arg0: i32) -> (i32, i32) {
    %c0_i32 = arith.constant 0 : i32
    %c0_i32_0 = arith.constant 0 : i32
    %c0_i32_1 = arith.constant 0 : i32
    return %c0_i32, %c0_i32_0 : i32, i32
  }
  func.func @transform_2(%arg0: i32) -> (i32, i32) {
    %c0_i32 = arith.constant 0 : i32
    %c0_i32_0 = arith.constant 0 : i32
    %c0_i32_1 = arith.constant 0 : i32
    return %c0_i32, %c0_i32_0 : i32, i32
  }
  func.func @transform_3(%arg0: i32) -> (i32, i32) {
    %c0_i32 = arith.constant 0 : i32
    %c0_i32_0 = arith.constant 0 : i32
    %c0_i32_1 = arith.constant 0 : i32
    return %c0_i32, %c0_i32_0 : i32, i32
  }
  func.func @transform_4(%arg0: i32) -> (i32, i32) {
    %c0_i32 = arith.constant 0 : i32
    %c0_i32_0 = arith.constant 0 : i32
    %c0_i32_1 = arith.constant 0 : i32
    return %c0_i32, %c0_i32_0 : i32, i32
  }
  func.func @transform_5(%arg0: i32) -> (i32, i32) {
    %c0_i32 = arith.constant 0 : i32
    %c0_i32_0 = arith.constant 0 : i32
    %c0_i32_1 = arith.constant 0 : i32
    return %c0_i32, %c0_i32_0 : i32, i32
  }
  func.func @transform_6(%arg0: i32) -> (i32, i32) {
    %c0_i32 = arith.constant 0 : i32
    %c0_i32_0 = arith.constant 0 : i32
    %c0_i32_1 = arith.constant 0 : i32
    return %c0_i32, %c0_i32_0 : i32, i32
  }
  func.func @transform_7(%arg0: i32) -> (i32, i32) {
    %c0_i32 = arith.constant 0 : i32
    %c0_i32_0 = arith.constant 0 : i32
    return %arg0, %c0_i32 : i32, i32
  }
  func.func @transform_8(%arg0: i32) -> (i32, i32) {
    %c0_i32 = arith.constant 0 : i32
    %c0_i32_0 = arith.constant 0 : i32
    return %arg0, %c0_i32 : i32, i32
  }
  func.func @transform_9(%arg0: i32) -> (i32, i32) {
    %c0_i32 = arith.constant 0 : i32
    %c0_i32_0 = arith.constant 0 : i32
    return %arg0, %c0_i32 : i32, i32
  }
}

</mosaic_0001>

<bundles_post_ra>
// kernel: tpu_custom_call.1
= control target key start
LH: loop header
LB: loop body
LE: loop exit
PB: predicated region body
PF: predicated region fallthrough
CT: control target
= control target key end

     0   :  { %s1559_s0 = inlined_call_operand.hbm [shape: f32[16,32], index: 0, kind: input, shape index: {}]   ;;  %s1560_s1 = inlined_call_operand.hbm [shape: bf16[32,32], index: 1, kind: input, shape index: {}]   ;;  %s1561_s2 = inlined_call_operand.vmem [shape: f32[1,32], index: 2, kind: input, shape index: {}]   ;;  %s1562_s3 = inlined_call_operand.hbm [shape: bf16[32,32], index: 3, kind: input, shape index: {}]   ;;  %s1563_s4 = inlined_call_operand.vmem [shape: f32[1,32], index: 4, kind: input, shape index: {}]   ;;  %s1564_s5 = inlined_call_operand.hbm [shape: bf16[32,32], index: 5, kind: input, shape index: {}]   ;;  %s1565_s6 = inlined_call_operand.vmem [shape: f32[1,32], index: 6, kind: input, shape index: {}]   ;;  %s1566_s7 = inlined_call_operand.hbm [shape: f32[16,32], index: 7, kind: output, shape index: {0}]   ;;  %s1567_s8 = inlined_call_operand.hbm [shape: f32[16,32], index: 8, kind: output, shape index: {1}]   ;;  %s1568_s9 = inlined_call_operand.hbm [shape: f32[16,32], index: 9, kind: output, shape index: {2}]  }
   0x1   :  { %1574 = sst [smem:[#allocation20_spill]] %s1560_s1 }
   0x2   :  { %1575 = sst [smem:[#allocation21_spill]] %s1562_s3 }
   0x3   :  { %1576 = sst [smem:[#allocation22_spill]] %s1564_s5 }
   0x4   :  { %15 = vsyncpa [#allocation3], 0 }
   0x5   :  { %17 = vsyncpa [#allocation3 + $0x1], 0 }
   0x6   :  { %18 = vsyncpa [#allocation6], 0 }
   0x7   :  { %19 = vsyncpa [#allocation9], 0 }
   0x8   :  { %20 = vsyncpa [#allocation4], 0 }
   0x9   :  { %22 = vsyncpa [#allocation4 + $0x1], 0 }
   0xa   :  { %23 = vsyncpa [#allocation12], 0 }
   0xb   :  { %25 = vsyncpa [#allocation12 + $0x1], 0  ;;  %s1282_s30 = smov 0   ;;  %s1284_s10 = smov 0  }
   0xc   :  { %s1286_s11 = smov 0   ;;  %s1288_s12 = smov 0  }
   0xd LB: > { %s1303_s13 = sadd.s32 4294967295, %s1219_s12   ;;  %s1571_s14 = sadd.s32 4294967294, %s1219_s12   ;;  %s1219_s12 = sphi %s1288_s12, %s1603_s12   ;;  %s1215_s11 = sphi %s1286_s11, %s1602_s11   ;;  %s1211_s10 = sphi %s1284_s10, %s1601_s10   ;;  %s1207_s30 = sphi %s1282_s30, %s1600_s30  }
   0xe   : > { %p51_p0 = scmp.ne.s32.totalorder %s1211_s10, %s1207_s30  ;;  %p1569_p1 = scmp.eq.s32.totalorder %s1303_s13, 0 }
   0xf   : > { %p207_p3 = scmp.eq.s32.totalorder %s1571_s14, 1  ;;  %p820_p5 = scmp.ge.s32.totalorder %s1219_s12, 1 }
  0x10   : > { %p1314_p4 = por %p1569_p1, %p51_p0  ;;  %p266_p7 = scmp.lt.s32.totalorder %s1219_s12, 3 }
  0x11   : > { %p1319_p6 = por %p207_p3, %p51_p0  ;;  %s1221_s18 = smov [#allocation5]  }
  0x12   : > { %s1577_s15 = scalar_select %p1314_p4, 1, 0 }
  0x13   : > { %s1578_s16 = scalar_select %p1319_p6, 1, 0 }
  0x14   : > { %p1324_p8 = pnand %p820_p5, %p266_p7  ;;  %s278_s19 = sshll.u32 %s1221_s18, 4  ;;  %s279_s19 = int_to_ptr.vmem [resolvable:$true] %s278_s19 }
  0x15   : > { %s1222_s21 = smov [#allocation7]   ;;  %s1223_s23 = smov [#allocation8]  }
  0x16   : > { %s1579_s17 = scalar_select %p1324_p8, 1, 0 }
  0x17   : > { %p908_p9 = pneg %p1324_p8  ;;  %s294_s22 = sshll.u32 %s1222_s21, 4  ;;  %s295_s22 = int_to_ptr.vmem [resolvable:$true] %s294_s22 }
  0x18   : > { %s310_s24 = sshll.u32 %s1223_s23, 4  ;;  %s996_s25 = scalar_lea.vmem %s279_s19, 256  ;;  %s311_s24 = int_to_ptr.vmem [resolvable:$true] %s310_s24 }
  0x19   : > { %p1333_p11 = pnand %p908_p9, %p1569_p1  ;;  %p997_p13 = scmp.ne.s32.totalorder %s279_s19, %s996_s25 }
  0x1a   : > { %p1004_p5 = scmp.lt.s32.totalorder %s279_s19, %s279_s19  ;;  %p1005_p7 = scmp.lt.s32.totalorder %s996_s25, %s996_s25 }
  0x1b   : > { %p987_p12 = pneg %p1333_p11 }
  0x1c   : > { %p1006_p9 = por %p1005_p7, %p1004_p5 }
  0x1d   : > { %p999_p0 = pnand %p997_p13, %p987_p12 }
  0x1f   : > { %p1000_p3 = pneg %p999_p0 }
  0x21   : > { %p1007_p10 = pnand %p1006_p9, %p1000_p3 }
  0x23   : > { %1010 = shalt.err (!%p1007_p10)
}
  0x24   : > { %s1224_s26 = smov 64   ;;  %s1225_s27 = smov 4  }
  0x25   : > { %s1581_s1 = sld [smem:[#allocation20_spill]]  ;;  %s1022_s18 = scalar_lea.vmem %s295_s22, 256 }
  0x26   : > { %p1023_p1 = scmp.ne.s32.totalorder %s295_s22, %s1022_s18  ;;  %p1030_p2 = scmp.lt.s32.totalorder %s295_s22, %s295_s22 }
  0x27   : > { %p1031_p6 = scmp.lt.s32.totalorder %s1022_s18, %s1022_s18 }
  0x28   : > { %p1025_p13 = pnand %p1023_p1, %p987_p12 }
  0x29   : > { %p1032_p5 = por %p1031_p6, %p1030_p2 }
  0x2a   : > { %p1026_p0 = pneg %p1025_p13 }
  0x2b   : > { %911 = dma.hbm_to_vmem [thread:$0]  (!%p1333_p11), %s1581_s1, 256, %s279_s19, [#allocation6], %s1224_s26, %s1224_s26, %s1225_s27  }
  0x2c   : > { %p1033_p3 = pnand %p1032_p5, %p1026_p0 }
  0x2e   : > { %1036 = shalt.err (!%p1033_p3)
}
  0x2f   : > { %s1582_s3 = sld [smem:[#allocation21_spill]]  ;;  %s1048_s19 = scalar_lea.vmem %s311_s24, 256 }
  0x30   : > { %p1049_p10 = scmp.ne.s32.totalorder %s311_s24, %s1048_s19  ;;  %p1056_p9 = scmp.lt.s32.totalorder %s311_s24, %s311_s24 }
  0x31   : > { %p1057_p13 = scmp.lt.s32.totalorder %s1048_s19, %s1048_s19 }
  0x32   : > { %p1051_p7 = pnand %p1049_p10, %p987_p12 }
  0x33   : > { %p1058_p4 = por %p1057_p13, %p1056_p9 }
  0x34   : > { %p1052_p1 = pneg %p1051_p7 }
  0x35   : > { %914 = dma.hbm_to_vmem [thread:$0]  (!%p1333_p11), %s1582_s3, 256, %s295_s22, [#allocation6], %s1224_s26, %s1224_s26, %s1225_s27  }
  0x36   : > { %p1059_p2 = pnand %p1058_p4, %p1052_p1 }
  0x38   : > { %1062 = shalt.err (!%p1059_p2)
}
  0x39   : > { %s1583_s5 = sld [smem:[#allocation22_spill]]  ;;  %s1364_s22 = sadd.s32 1, %s1219_s12  }
  0x3a   : > { %s35_s29 = ssub.s32 %s1219_s12, %s1364_s22  ;;  %s38_s20 = sadd.s32 1, %s1215_s11 }
  0x3b   : > { %p36_p4 = scmp.eq.s32.totalorder %s35_s29, 0  ;;  %p45_p6 = scmp.ne.s32.totalorder %s1215_s11, %s1211_s10 }
  0x3c   : > { %p46_p12 = scmp.eq.s32.totalorder %s1219_s12, 0  ;;  %p935_p0 = scmp.lt.s32.totalorder %s1219_s12, 2 }
  0x3d   : > { %s1374_s18 = scalar_select %p36_p4, %s1215_s11, %s38_s20  }
  0x3e   : > { %p47_p5 = por %p46_p12, %p45_p6  ;;  %p1585_p3 = scmp.eq.s32.totalorder %s1303_s13, 1 }
  0x3f   : > { %917 = dma.hbm_to_vmem [thread:$0]  (!%p1333_p11), %s1583_s5, 256, %s311_s24, [#allocation9], %s1224_s26, %s1224_s26, %s1225_s27  }
  0x40   : > { %1584 = sst [smem:[#allocation19_spill]] %s1374_s18  ;;  %p1378_p10 = por %p1585_p3, %p45_p6 }
  0x41   : > { %s327_s23 = sand.u32 1, %s1215_s11   ;;  %s826_s19 = sshll.u32 %s1219_s12, 7 }
  0x42   : > { %s1586_s21 = scalar_select %p1378_p10, 1, 0 }
  0x43   : > { %s825_s24 = sshll.u32 %s327_s23, 3  ;;  %s1387_s25 = scalar_lea.hbm %s1559_s0, %s826_s19 }
  0x44   : > { %s331_s28 = scalar_lea.vmem [#allocation2], %s825_s24  ;;  %p1389_p11 = pnand %p935_p0, %p47_p5 }
  0x45   : > { %s338_s29 = sshll.u32 %s331_s28, 4  ;;  %s328_s14 = scalar_lea.sflag [#allocation3], %s327_s23  ;;  %s339_s29 = int_to_ptr.vmem [resolvable:$true] %s338_s29 }
  0x46   : > { %s1063_s1 = scalar_lea.hbm %s1387_s25, 128  ;;  %p1065_p1 = pneg %p1389_p11 }
  0x47   : > { %p1064_p7 = scmp.ne.s32.totalorder %s1387_s25, %s1063_s1  ;;  %s1068_s27 = scalar_lea.hbm %s1559_s0, 256 }
  0x48   : > { %p1069_p2 = scmp.lt.s32.totalorder %s1387_s25, %s1559_s0  ;;  %p1070_p4 = scmp.lt.s32.totalorder %s1068_s27, %s1063_s1 }
  0x49   : > { %p1066_p9 = pnand %p1065_p1, %p1064_p7 }
  0x4a   : > { %p1071_p6 = por %p1070_p4, %p1069_p2 }
  0x4b   : > { %p1067_p13 = pneg %p1066_p9 }
  0x4d   : > { %p1072_p12 = pnand %p1071_p6, %p1067_p13 }
  0x4f   : > { %1075 = shalt.err (!%p1072_p12)
}
  0x50   : > { %s1076_s28 = scalar_lea.vmem %s339_s29, 128  ;;  %s1226_s23 = smov [#allocation2]  }
  0x51   : > { %p1077_p0 = scmp.ne.s32.totalorder %s339_s29, %s1076_s28  ;;  %s1081_s5 = sshll.u32 %s1226_s23, 4  ;;  %s1082_s5 = int_to_ptr.vmem [resolvable:$false] %s1081_s5 }
  0x52   : > { %s1083_s18 = scalar_lea.vmem %s1082_s5, 256  ;;  %p1084_p7 = scmp.lt.s32.totalorder %s339_s29, %s1082_s5 }
  0x53   : > { %p1079_p5 = pnand %p1077_p0, %p1065_p1  ;;  %p1085_p9 = scmp.lt.s32.totalorder %s1083_s18, %s1076_s28 }
  0x55   : > { %p1080_p3 = pneg %p1079_p5  ;;  %p1086_p10 = por %p1085_p9, %p1084_p7 }
  0x57   : > { %p1087_p8 = pnand %p1086_p10, %p1080_p3 }
  0x59   : > { %1090 = shalt.err (!%p1087_p8)
}
  0x5a   : > { %921 = dma.hbm_to_vmem [thread:$0]  (!%p1389_p11), %s1387_s25, 128, %s339_s29, %s328_s14  }
  0x5b   : > { %p1588_p13 = scmp.ne.s32.totalorder %s1579_s17, 0 }
  0x5c   : > { %s1410_s1 = sand.u32 (!%p1588_p13), 1, %s1211_s10   ;;  %p1589_p10 = scmp.ne.s32.totalorder (!%p1588_p13), %s1577_s15, 0 }
  0x5d   : > { %347 = sbr.rel (%p1588_p13) target bundleno = 370 (0x172), region = 48  ;;  %s1413_s3 = sshll.u32 (!%p1588_p13), %s1410_s1, 3 }
  0x5e   : > { %s350_s5 = scalar_lea.sflag (!%p1588_p13), [#allocation3], %s1410_s1  ;;  %s353_s18 = scalar_lea.vmem (!%p1588_p13), [#allocation2], %s1413_s3 }
  0x62   : > { %1186 = dma.done.wait (%p1589_p10), %s350_s5, 128  }
  0x63   : > { %1188 = vsyncadd (%p1589_p10), %s350_s5, 4294967168  ;;  %p1590_p8 = scmp.eq.s32.totalorder %s1303_s13, 0 }
  0x65   : > { %1190 = dma.done.wait (%p1590_p8), [#allocation6], 512   ;;  %p1591_p11 = pmov %p1590_p8 }
  0x66   : > { %p1592_p1 = pmov %p1590_p8 }
  0x67   : > { %1192 = vsyncadd (%p1591_p11), [#allocation6], 4294966784 }
  0x68   : > { %1194 = dma.done.wait (%p1592_p1), [#allocation9], 256   ;;  %p1593_p2 = pmov %p1592_p1 }
  0x69   : > { %v1227_v0 = vmov 0.0   ;;  %vm1228_vm0 = vmmov 0   ;;  %v979_v1 = vld [vmem:[#allocation5 + $0x8] sm:$0xff]   ;;  %v980_v2 = vld [vmem:[#allocation7 + $0x8] sm:$0xff]   ;;  %v981_v3 = vld [vmem:[#allocation5] sm:$0xff]   ;;  %vm436_vm1 = vcmask 261120  }
  0x6a   : > { %1196 = vsyncadd (%p1593_p2), [#allocation9], 4294967040  ;;  %864 = vmatprep.subr.bf16.mxu0 %v1227_v0  ;;  %872 = vmatprep.subr.bf16.mxu1 %v1227_v0  ;;  %v411_v4 = vld [vmem:[%s353_s18] sm:$0xff]  ;;  %v983_v7 = vld [vmem:[#allocation8 + $0x8] sm:$0xff]   ;;  %s1440_s25 = sshll.u32 %s1303_s13, 7  ;;  %s395_s29 = scalar_lea.vmem [#allocation10], %s1413_s3 }
  0x6b   : > { %868 = vmatprep.mubr.msk.bf16.mxu0 %vm1228_vm0, %v1227_v0  ;;  %876 = vmatprep.mubr.msk.bf16.mxu1 %vm1228_vm0, %v1227_v0  ;;  %v982_v5 = vld [vmem:[#allocation7] sm:$0xff]   ;;  %v412_v6 = vpack.c.bf16 %v411_v4, %v411_v4  ;;  %v984_v8 = vld [vmem:[#allocation8] sm:$0xff]   ;;  %s633_s20 = sshll.u32 %s395_s29, 4  ;;  %s402_s27 = scalar_lea.vmem [#allocation11], %s1413_s3  ;;  %s1453_s20 = int_to_ptr.vmem [resolvable:$true] %s633_s20 }
  0x6c   : > { %865 = vmatpush3.bf16.msra.mxu0 %v979_v1  ;;  %873 = vmatpush3.bf16.msra.mxu1 %v980_v2  ;;  %v835_v9 = vld [vmem:[%s1561_s2] ss:$0 sm:$0xff]  ;;  %s646_s24 = sshll.u32 %s402_s27, 4  ;;  %s1451_s5 = scalar_lea.hbm %s1566_s7, %s1440_s25  ;;  %s1461_s24 = int_to_ptr.vmem [resolvable:$true] %s646_s24 }
  0x6d   : > { %866 = vmatprep.subr.bf16.mxu0 %v1227_v0  ;;  %874 = vmatprep.subr.bf16.mxu1 %v1227_v0  ;;  %v839_v10 = vld [vmem:[%s1563_s4] ss:$0 sm:$0xff]  ;;  %s1459_s17 = scalar_lea.hbm %s1567_s8, %s1440_s25  ;;  %s610_s19 = scalar_lea.sflag [#allocation4], %s1410_s1 }
  0x6e   : > { %s1091_s26 = scalar_lea.vmem %s1453_s20, 128  ;;  %p1594_p6 = scmp.ne.s32.totalorder %s1586_s21, 0 }
  0x6f   : > { %p1092_p4 = scmp.ne.s32.totalorder %s1453_s20, %s1091_s26  ;;  %s1229_s28 = smov [#allocation10]  }
  0x70   : > { %867 = vmatpush3.bf16.msra.mxu0 %v981_v3  ;;  %875 = vmatpush3.bf16.msra.mxu1 %v982_v5  ;;  %s1095_s23 = sshll.u32 %s1229_s28, 4  ;;  %s1096_s23 = int_to_ptr.vmem [resolvable:$false] %s1095_s23 }
  0x71   : > { %880 = vmatprep.subr.bf16.mxu0 %v1227_v0  ;;  %p1093_p12 = pnand %p1092_p4, %p1594_p6  ;;  %s1097_s18 = scalar_lea.vmem %s1096_s23, 256 }
  0x72   : > { %p1098_p5 = scmp.lt.s32.totalorder %s1453_s20, %s1096_s23  ;;  %p1099_p3 = scmp.lt.s32.totalorder %s1097_s18, %s1091_s26 }
  0x73   : > { %869 = vmatmul.mubr.msk.bf16.vlgmr.msra.gmra.mxu0 %vm436_vm1, %v412_v6  ;;  %877 = vmatmul.mubr.msk.bf16.vlgmr.msra.gmra.mxu1 %vm436_vm1, %v412_v6  ;;  %p1094_p0 = pneg %p1093_p12 }
  0x74   : > { %881 = vmatpush3.bf16.msra.mxu0 %v983_v7  ;;  %884 = vmatprep.mubr.msk.bf16.mxu0 %vm1228_vm0, %v1227_v0  ;;  %p1100_p7 = por %p1099_p3, %p1098_p5 }
  0x75   : > { %882 = vmatprep.subr.bf16.mxu0 %v1227_v0 }
  0x76   : > { %p1101_p9 = pnand %p1100_p7, %p1094_p0 }
  0x78   : > { %883 = vmatpush3.bf16.msra.mxu0 %v984_v8 }
  0x7b   : > { %885 = vmatmul.mubr.msk.bf16.vlgmr.msra.gmra.mxu0 %vm436_vm1, %v412_v6 }
 0x133   : > { %v474_v11 = vpop.f32.mrf.mxu0  ;;  %v538_v13 = vpop.f32.mrf.mxu1 }
 0x134   : > { %v475_v12 = vadd.f32 %v835_v9, %v474_v11  ;;  %v539_v15 = vadd.f32 %v839_v10, %v538_v13 }
 0x135   : > { %v870_v14 = vpop.f32.mrf.mxu0  ;;  %v878_v16 = vpop.f32.mrf.mxu1 }
 0x136   : > { %480 = vst.msk [vmem:[%s395_s29] sm:$0xff] %vm436_vm1, %v475_v12  ;;  %544 = vst.msk [vmem:[%s402_s27] sm:$0xff] %vm436_vm1, %v539_v15 }
 0x137   : > { %v477_v17 = vpop.f32.mrf.mxu0 }
 0x138   : > { %1104 = shalt.err (!%p1101_p9)
}
 0x139   : > { %s1105_s29 = scalar_lea.hbm %s1451_s5, 128  ;;  %s1109_s15 = scalar_lea.hbm %s1566_s7, 256 }
 0x13a   : > { %p1106_p13 = scmp.ne.s32.totalorder %s1451_s5, %s1105_s29  ;;  %p1110_p11 = scmp.lt.s32.totalorder %s1451_s5, %s1566_s7 }
 0x13b   : > { %p1111_p1 = scmp.lt.s32.totalorder %s1109_s15, %s1105_s29 }
 0x13c   : > { %p1107_p10 = pnand %p1106_p13, %p1594_p6 }
 0x13d   : > { %p1112_p2 = por %p1111_p1, %p1110_p11 }
 0x13e   : > { %p1108_p8 = pneg %p1107_p10 }
 0x140   : > { %p1113_p4 = pnand %p1112_p2, %p1108_p8 }
 0x142   : > { %1116 = shalt.err (!%p1113_p4)
}
 0x143   : > { %902 = dma.vmem_to_hbm [thread:$0]  (%p1594_p6), %s1453_s20, 128, %s1451_s5, %s610_s19   ;;  %v541_v18 = vpop.f32.mrf.mxu1 }
 0x144   : > { %s1595_s26 = sand.u32 1, %s1303_s13   ;;  %s1117_s14 = scalar_lea.vmem %s1461_s24, 128 }
 0x145   : > { %s1488_s23 = scalar_lea.sflag [#allocation12], %s1595_s26  ;;  %p1118_p12 = scmp.ne.s32.totalorder %s1461_s24, %s1117_s14 }
 0x146   : > { %s1230_s18 = smov [#allocation11]  }
 0x147   : > { %p1119_p0 = pnand %p1118_p12, %p1594_p6  ;;  %s1121_s29 = sshll.u32 %s1230_s18, 4  ;;  %s1122_s29 = int_to_ptr.vmem [resolvable:$false] %s1121_s29 }
 0x148   : > { %s1123_s1 = scalar_lea.vmem %s1122_s29, 256  ;;  %p1124_p3 = scmp.lt.s32.totalorder %s1461_s24, %s1122_s29 }
 0x149   : > { %p1120_p5 = pneg %p1119_p0  ;;  %p1125_p7 = scmp.lt.s32.totalorder %s1123_s1, %s1117_s14 }
 0x14b   : > { %p1126_p9 = por %p1125_p7, %p1124_p3 }
 0x14d   : > { %p1127_p13 = pnand %p1126_p9, %p1120_p5 }
 0x14f   : > { %1130 = shalt.err (!%p1127_p13)
}
 0x150   : > { %s1131_s13 = scalar_lea.hbm %s1459_s17, 128  ;;  %s1135_s19 = scalar_lea.hbm %s1567_s8, 256 }
 0x151   : > { %p1132_p10 = scmp.ne.s32.totalorder %s1459_s17, %s1131_s13  ;;  %p1136_p1 = scmp.lt.s32.totalorder %s1459_s17, %s1567_s8 }
 0x152   : > { %p1137_p2 = scmp.lt.s32.totalorder %s1135_s19, %s1131_s13 }
 0x153   : > { %p1133_p8 = pnand %p1132_p10, %p1594_p6 }
 0x154   : > { %p1138_p4 = por %p1137_p2, %p1136_p1 }
 0x155   : > { %p1134_p11 = pneg %p1133_p8 }
 0x157   : > { %p1139_p12 = pnand %p1138_p4, %p1134_p11 }
 0x159   : > { %1142 = shalt.err (!%p1139_p12)
}
 0x15a   : > { %903 = dma.vmem_to_hbm [thread:$0]  (%p1594_p6), %s1461_s24, 128, %s1459_s17, %s1488_s23   ;;  %v871_v19 = vpop.f32.mrf.mxu0  ;;  %v843_v20 = vld [vmem:[%s1565_s6] ss:$0 sm:$0xff]  ;;  %v879_v21 = vpop.f32.mrf.mxu1 }
 0x15b   : > { %s409_s14 = scalar_lea.vmem [#allocation13], %s1413_s3  ;;  %s1519_s13 = scalar_lea.hbm %s1568_s9, %s1440_s25 }
 0x15c   : > { %s659_s18 = sshll.u32 %s409_s14, 4  ;;  %v602_v22 = vpop.f32.mrf.mxu0  ;;  %s1231_s3 = smov [#allocation13]   ;;  %s660_s18 = int_to_ptr.vmem [resolvable:$true] %s659_s18 }
 0x15d   : > { %v603_v23 = vadd.f32 %v843_v20, %v602_v22  ;;  %s1143_s24 = scalar_lea.vmem %s660_s18, 128  ;;  %s1147_s17 = sshll.u32 %s1231_s3, 4  ;;  %s1148_s17 = int_to_ptr.vmem [resolvable:$false] %s1147_s17 }
 0x15e   : > { %v886_v24 = vpop.f32.mrf.mxu0  ;;  %p1144_p0 = scmp.ne.s32.totalorder %s660_s18, %s1143_s24  ;;  %s1149_s20 = scalar_lea.vmem %s1148_s17, 256 }
 0x15f   : > { %608 = vst.msk [vmem:[%s409_s14] sm:$0xff] %vm436_vm1, %v603_v23  ;;  %p1150_p7 = scmp.lt.s32.totalorder %s660_s18, %s1148_s17  ;;  %p1151_p9 = scmp.lt.s32.totalorder %s1149_s20, %s1143_s24 }
 0x160   : > { %v605_v25 = vpop.f32.mrf.mxu0  ;;  %p1145_p5 = pnand %p1144_p0, %p1594_p6 }
 0x161   : > { %p1152_p13 = por %p1151_p9, %p1150_p7 }
 0x162   : > { %p1146_p3 = pneg %p1145_p5 }
 0x164   : > { %p1153_p10 = pnand %p1152_p13, %p1146_p3 }
 0x166   : > { %1156 = shalt.err (!%p1153_p10)
}
 0x167   : > { %s1157_s25 = scalar_lea.hbm %s1519_s13, 128  ;;  %s1161_s27 = scalar_lea.hbm %s1568_s9, 256 }
 0x168   : > { %p1158_p8 = scmp.ne.s32.totalorder %s1519_s13, %s1157_s25  ;;  %p1162_p2 = scmp.lt.s32.totalorder %s1519_s13, %s1568_s9 }
 0x169   : > { %p1163_p4 = scmp.lt.s32.totalorder %s1161_s27, %s1157_s25 }
 0x16a   : > { %p1159_p11 = pnand %p1158_p8, %p1594_p6 }
 0x16b   : > { %p1164_p12 = por %p1163_p4, %p1162_p2 }
 0x16c   : > { %p1160_p1 = pneg %p1159_p11 }
 0x16e   : > { %p1165_p0 = pnand %p1164_p12, %p1160_p1 }
 0x170   : > { %1168 = shalt.err (!%p1165_p0)
}
 0x171   : > { %904 = dma.vmem_to_hbm [thread:$0]  (%p1594_p6), %s660_s18, 128, %s1519_s13, %s1488_s23   ;;  %v887_v26 = vpop.f32.mrf.mxu0 }
 0x172 PF: > { %s671_s26 = sand.u32 1, %s1207_s30   ;;  %p1596_p5 = scmp.ne.s32.totalorder %s1578_s16, 0 }
 0x173   : > { %p1597_p3 = scmp.ge.s32.totalorder %s1219_s12, 2  ;;  %s672_s14 = scalar_lea.sflag [#allocation4], %s671_s26 }
 0x175   : > { %p923_p7 = pnand %p1597_p3, %p1596_p5 }
 0x177   : > { %p924_p9 = pneg %p923_p7 }
 0x179   : > { %1198 = dma.done.wait (%p924_p9), %s672_s14, 128  }
 0x17a   : > { %1200 = vsyncadd (%p924_p9), %s672_s14, 4294967168  ;;  %s1598_s29 = sadd.s32 4294967294, %s1219_s12  }
 0x17b   : > { %s680_s1 = sand.u32 1, %s1598_s29  }
 0x17c   : > { %s681_s21 = scalar_lea.sflag [#allocation12], %s680_s1 }
 0x17d   : > { %1202 = dma.done.wait (%p924_p9), %s681_s21, 256  }
 0x17e   : > { %1204 = vsyncadd (%p924_p9), %s681_s21, 4294967040  ;;  %s1599_s23 = sld [smem:[#allocation19_spill]]  ;;  %p28_p6 = scmp.ge.s32.totalorder %s1364_s22, 4  }
 0x17f   : > { %s1600_s30 = smov %s1211_s10  ;;  %s1601_s10 = smov %s1215_s11 }
 0x180   : > { %s1603_s12 = smov %s1364_s22  ;;  %30 = sbr.rel (!%p28_p6) target bundleno = 13 (0xd), region = 137 }
 0x184   : > { %s1602_s11 = smov %s1599_s23 }
 0x185   :  { %695 = vsyncpa [#allocation3], 1 }
 0x186   :  { %697 = vsyncpa [#allocation3 + $0x1], 1 }
 0x187   :  { %698 = vsyncpa [#allocation6], 1 }
 0x188   :  { %699 = vsyncpa [#allocation9], 1 }
 0x189   :  { %700 = vsyncpa [#allocation4], 1 }
 0x18a   :  { %702 = vsyncpa [#allocation4 + $0x1], 1 }
 0x18b   :  { %703 = vsyncpa [#allocation12], 1 }
 0x18c   :  { %705 = vsyncpa [#allocation12 + $0x1], 1 }

</bundles_post_ra>
